<compile_context>
chip_gen: v5e
topology: v5e:2x2
jax: 0.10.0
libtpu: 0.0.40
codegen_flags: <defaults>
</compile_context>

<pallas_src>
import jax
import jax.numpy as jnp
from jax.experimental import pallas as pl
from jax.experimental.pallas import tpu as pltpu


def _diag_matmul_kernel(a_ref, b_ref, o_ref):
    # a_ref: (tm, 1) column of diagonal values for this row stripe
    # b_ref: (tm, tn) tile of B
    # Row-scale on the VPU; broadcast along the lane (last) dim is free.
    o_ref[...] = a_ref[...] * b_ref[...]


def _pick_tile(dim, align, cap):
    """Largest multiple of `align` that divides `dim` and is <= cap.

    Falls back to the full dim if the dim is already <= cap (full-extent blocks
    are always legal) or if no aligned divisor exists.
    """
    if dim <= cap:
        return dim
    t = (cap // align) * align
    while t >= align:
        if dim % t == 0:
            return t
        t -= align
    return dim  # full-extent fallback (legal, but only hit for pathological dims)


def diag_matmul(A, B):
    """Compute diag(A) @ B  ==  A[:, None] * B  with a Pallas TPU kernel.

    A: (N,) float32
    B: (N, M) float32
    returns: (N, M) float32
    """
    N, M = B.shape
    assert A.shape == (N,)
    A2 = A.reshape(N, 1)

    # --- Tile selection -------------------------------------------------------
    # Target ~2 MiB per f32 tile: with double-buffered B input + double-buffered
    # output (+ tiny A column) the live VMEM footprint is ~4 tiles ~= 8 MiB,
    # comfortably inside the default scoped VMEM on v5e (16 MiB) / v6e / v7x.
    TILE_BYTES = 2 * 1024 * 1024
    TM_CAP = 512

    tm = _pick_tile(N, 8, TM_CAP)
    # Lane-dense last dim: as wide as the byte budget allows, multiple of 128.
    tn_cap = max(128, (TILE_BYTES // (4 * tm) // 128) * 128)
    tn = _pick_tile(M, 128, tn_cap)

    grid = (pl.cdiv(N, tm), pl.cdiv(M, tn))

    cost = pl.CostEstimate(
        flops=N * M,
        transcendentals=0,
        bytes_accessed=(2 * N * M + N) * 4,
    )

    return pl.pallas_call(
        _diag_matmul_kernel,
        out_shape=jax.ShapeDtypeStruct((N, M), B.dtype),
        grid_spec=pl.GridSpec(
            grid=grid,
            in_specs=[
                # A column stripe: index_map independent of j -> reused across M.
                pl.BlockSpec((tm, 1), lambda i, j: (i, 0)),
                # B tile: lane-dense row stripe.
                pl.BlockSpec((tm, tn), lambda i, j: (i, j)),
            ],
            out_specs=pl.BlockSpec((tm, tn), lambda i, j: (i, j)),
        ),
        compiler_params=pltpu.CompilerParams(
            dimension_semantics=("parallel", "parallel"),
            vmem_limit_bytes=32 * 1024 * 1024,
        ),
        cost_estimate=cost,
    )(A2, B)


if __name__ == "__main__":
    key = jax.random.PRNGKey(0)
    kA, kB = jax.random.split(key)

    # Small shapes consistent with the module's forward (A: (N,), B: (N, M)).
    N, M = 64, 256
    A = jax.random.normal(kA, (N,), dtype=jnp.float32)
    B = jax.random.normal(kB, (N, M), dtype=jnp.float32)

    out = diag_matmul(A, B)
    out = jax.block_until_ready(out)

    ref = A[:, None] * B
    assert out.shape == (N, M)
    assert jnp.allclose(out, ref, atol=1e-6, rtol=1e-6)

    print("KERNEL_OK")
</pallas_src>

<mosaic_0001>
module attributes {stable_mosaic.version = 11 : i64} {
  func.func @_diag_matmul_kernel(%arg0: i32, %arg1: i32, %arg2: memref<64x1xf32, #tpu.memory_space<vmem>>, %arg3: memref<64x256xf32, #tpu.memory_space<vmem>>, %arg4: memref<64x256xf32, #tpu.memory_space<vmem>>) attributes {dimension_semantics = [#tpu.dimension_semantics<parallel>, #tpu.dimension_semantics<parallel>], iteration_bounds = array<i64: 1, 1>, scalar_prefetch = 0 : i64, scratch_operands = 0 : i64, tpu.core_type = #tpu.core_type<tc>, window_params = [{transform_indices = @transform_0, window_bounds = array<i64: 64, 1>}, {transform_indices = @transform_1, window_bounds = array<i64: 64, 256>}, {transform_indices = @transform_2, window_bounds = array<i64: 64, 256>}]} {
    %c0 = arith.constant 0 : index
    %c0_0 = arith.constant 0 : index
    %0 = vector.load %arg2[%c0, %c0_0] : memref<64x1xf32, #tpu.memory_space<vmem>>, vector<64x1xf32>
    %c0_1 = arith.constant 0 : index
    %c0_2 = arith.constant 0 : index
    %1 = vector.load %arg3[%c0_1, %c0_2] : memref<64x256xf32, #tpu.memory_space<vmem>>, vector<64x256xf32>
    %2 = vector.broadcast %0 : vector<64x1xf32> to vector<64x256xf32>
    %3 = arith.mulf %2, %1 : vector<64x256xf32>
    %c0_3 = arith.constant 0 : index
    %c0_4 = arith.constant 0 : index
    %4 = vector.load %arg4[%c0_3, %c0_4] : memref<64x256xf32, #tpu.memory_space<vmem>>, vector<64x256xf32>
    tpu.vector_store %arg4[%c0_3, %c0_4], %3 {strides = array<i32>} : memref<64x256xf32, #tpu.memory_space<vmem>>, vector<64x256xf32>,
    return
  }
  func.func @transform_0(%arg0: i32, %arg1: i32) -> (i32, i32) {
    %c0_i32 = arith.constant 0 : i32
    %c0_i32_0 = arith.constant 0 : i32
    return %arg0, %c0_i32 : i32, i32
  }
  func.func @transform_1(%arg0: i32, %arg1: i32) -> (i32, i32) {
    %c0_i32 = arith.constant 0 : i32
    return %arg0, %arg1 : i32, i32
  }
  func.func @transform_2(%arg0: i32, %arg1: i32) -> (i32, i32) {
    %c0_i32 = arith.constant 0 : i32
    return %arg0, %arg1 : i32, i32
  }
}

</mosaic_0001>

<bundles_post_ra>
// kernel: tpu_custom_call.1
= control target key start
LH: loop header
LB: loop body
LE: loop exit
PB: predicated region body
PF: predicated region fallthrough
CT: control target
= control target key end

     0   :  { %7 = vsyncpa [#allocation3], 0  ;;  %s259_s0 = inlined_call_operand.vmem [shape: f32[64,1], index: 0, kind: input, shape index: {}]   ;;  %s260_s1 = inlined_call_operand.hbm [shape: f32[64,256], index: 1, kind: input, shape index: {}]   ;;  %s261_s2 = inlined_call_operand.hbm [shape: f32[64,256], index: 2, kind: output, shape index: {}]  }
   0x1   :  { %8 = vsyncpa [#allocation4], 0  ;;  %s15_s11 = sshll.u32 %s260_s1, 4  ;;  %s203_s12 = smov [#allocation2]   ;;  %s16_s11 = int_to_ptr.hbm [resolvable:$true] %s15_s11 }
   0x2   :  { %s17_s13 = sshll.u32 %s203_s12, 4  ;;  %s204_s14 = smov 256   ;;  %s18_s13 = int_to_ptr.vmem [resolvable:$true] %s17_s13 }
   0x3   :  { %s205_s15 = smov 16  }
   0x4   :  { %23 = dma.hbm_to_vmem [thread:$0]  %s16_s11, 2048, %s18_s13, [#allocation3], %s204_s14, %s204_s14, %s205_s15  }
   0x5   :  { %199 = dma.done.wait [#allocation3], 2048  }
   0x6   :  { %200 = vsyncadd [#allocation3], 4294965248  ;;  %v206_v0 = vmov 0   ;;  %v30_v1 = vld [vmem:[%s259_s0 + $0x10] sm:$0xff]  ;;  %v28_v2 = vld [vmem:[%s259_s0] sm:$0xff]  ;;  %s130_s6 = sshll.u32 %s261_s2, 4  ;;  %s131_s6 = int_to_ptr.hbm [resolvable:$true] %s130_s6 }
   0x7   :  { %149 = vset.pattern.permute.xlu1 %v206_v0  ;;  %148 = vset.pattern.permute.xlu0 %v206_v0  ;;  %v32_v3 = vld [vmem:[%s259_s0 + $0x20] sm:$0xff]  ;;  %v31_v4 = vld [vmem:[%s259_s0 + $0x18] sm:$0xff]  ;;  %v29_v5 = vld [vmem:[%s259_s0 + $0x8] sm:$0xff] }
   0x8   :  { %150 = vset.pattern.permute.xlu2 %v206_v0  ;;  %64 = vperm.xlu1 %149, %v30_v1   ;;  %v33_v6 = vld [vmem:[%s259_s0 + $0x28] sm:$0xff]  ;;  %v35_v7 = vld [vmem:[%s259_s0 + $0x38] sm:$0xff]  ;;  %v34_v8 = vld [vmem:[%s259_s0 + $0x30] sm:$0xff]  ;;  %s207_s0 = smov [#allocation5]  }
   0x9   :  { %54 = vperm.xlu0 %148, %v28_v2   ;;  %74 = vperm.xlu2 %150, %v32_v3   ;;  %v44_v9 = vld [vmem:[#allocation2 + $0x40] sm:$0xff]  ;;  %v45_v10 = vld [vmem:[#allocation2 + $0x48] sm:$0xff]  ;;  %v46_v14 = vld [vmem:[#allocation2 + $0x50] sm:$0xff]  ;;  %s128_s3 = sshll.u32 %s207_s0, 4  ;;  %s129_s3 = int_to_ptr.vmem [resolvable:$true] %s128_s3 }
   0xa   :  { %v47_v15 = vld [vmem:[#allocation2 + $0x58] sm:$0xff]  ;;  %v40_v19 = vld [vmem:[#allocation2 + $0x20] sm:$0xff]  ;;  %v41_v20 = vld [vmem:[#allocation2 + $0x28] sm:$0xff] }
   0xb   :  { %v36_v21 = vld [vmem:[#allocation2] sm:$0xff]  ;;  %v37_v22 = vld [vmem:[#allocation2 + $0x8] sm:$0xff]  ;;  %v42_v29 = vld [vmem:[#allocation2 + $0x30] sm:$0xff] }
   0xc   :  { %v43_v30 = vld [vmem:[#allocation2 + $0x38] sm:$0xff]  ;;  %v38_v31 = vld [vmem:[#allocation2 + $0x10] sm:$0xff]  ;;  %v48_v41 = vld [vmem:[#allocation2 + $0x60] sm:$0xff] }
   0xd   :  { %v39_v32 = vld [vmem:[#allocation2 + $0x18] sm:$0xff]  ;;  %v50_v39 = vld [vmem:[#allocation2 + $0x70] sm:$0xff]  ;;  %v49_v42 = vld [vmem:[#allocation2 + $0x68] sm:$0xff] }
   0xe   :  { %v51_v40 = vld [vmem:[#allocation2 + $0x78] sm:$0xff] }
  0x10   :  { %69 = vperm.xlu1 %149, %v31_v4  }
  0x11   :  { %59 = vperm.xlu0 %148, %v29_v5   ;;  %79 = vperm.xlu2 %150, %v33_v6  }
  0x18   :  { %89 = vperm.xlu1 %149, %v35_v7  }
  0x19   :  { %84 = vperm.xlu0 %148, %v34_v8  }
  0x63   :  { %v75_v11 = vpop.permute.xlu2 %74 }
  0x64   :  { %v100_v12 = vmul.f32 %v75_v11, %v44_v9  ;;  %v101_v13 = vmul.f32 %v75_v11, %v45_v10 }
  0x66   :  { %116 = vst [vmem:[#allocation5 + $0x40] sm:$0xff] %v100_v12 }
  0x67   :  { %117 = vst [vmem:[#allocation5 + $0x48] sm:$0xff] %v101_v13 }
  0x6b   :  { %v80_v16 = vpop.permute.xlu2 %79 }
  0x6c   :  { %v102_v17 = vmul.f32 %v80_v16, %v46_v14  ;;  %v103_v18 = vmul.f32 %v80_v16, %v47_v15 }
  0x6e   :  { %118 = vst [vmem:[#allocation5 + $0x50] sm:$0xff] %v102_v17 }
  0x6f   :  { %119 = vst [vmem:[#allocation5 + $0x58] sm:$0xff] %v103_v18 }
  0x7a   :  { %v65_v23 = vpop.permute.xlu1 %64 }
  0x7b   :  { %v55_v24 = vpop.permute.xlu0 %54  ;;  %v96_v25 = vmul.f32 %v65_v23, %v40_v19  ;;  %v97_v26 = vmul.f32 %v65_v23, %v41_v20 }
  0x7c   :  { %v92_v27 = vmul.f32 %v55_v24, %v36_v21  ;;  %v93_v28 = vmul.f32 %v55_v24, %v37_v22 }
  0x7d   :  { %112 = vst [vmem:[#allocation5 + $0x20] sm:$0xff] %v96_v25 }
  0x7e   :  { %113 = vst [vmem:[#allocation5 + $0x28] sm:$0xff] %v97_v26 }
  0x7f   :  { %108 = vst [vmem:[#allocation5] sm:$0xff] %v92_v27 }
  0x80   :  { %109 = vst [vmem:[#allocation5 + $0x8] sm:$0xff] %v93_v28 }
  0x82   :  { %v70_v33 = vpop.permute.xlu1 %69 }
  0x83   :  { %v60_v34 = vpop.permute.xlu0 %59  ;;  %v98_v35 = vmul.f32 %v70_v33, %v42_v29  ;;  %v99_v36 = vmul.f32 %v70_v33, %v43_v30 }
  0x84   :  { %v94_v37 = vmul.f32 %v60_v34, %v38_v31  ;;  %v95_v38 = vmul.f32 %v60_v34, %v39_v32 }
  0x85   :  { %114 = vst [vmem:[#allocation5 + $0x30] sm:$0xff] %v98_v35 }
  0x86   :  { %115 = vst [vmem:[#allocation5 + $0x38] sm:$0xff] %v99_v36 }
  0x87   :  { %110 = vst [vmem:[#allocation5 + $0x10] sm:$0xff] %v94_v37 }
  0x88   :  { %111 = vst [vmem:[#allocation5 + $0x18] sm:$0xff] %v95_v38 }
  0x8a   :  { %v90_v43 = vpop.permute.xlu1 %89 }
  0x8b   :  { %v85_v44 = vpop.permute.xlu0 %84  ;;  %v106_v45 = vmul.f32 %v90_v43, %v50_v39  ;;  %v107_v46 = vmul.f32 %v90_v43, %v51_v40 }
  0x8c   :  { %v104_v47 = vmul.f32 %v85_v44, %v48_v41  ;;  %v105_v48 = vmul.f32 %v85_v44, %v49_v42 }
  0x8d   :  { %122 = vst [vmem:[#allocation5 + $0x70] sm:$0xff] %v106_v45 }
  0x8e   :  { %123 = vst [vmem:[#allocation5 + $0x78] sm:$0xff] %v107_v46 }
  0x8f   :  { %120 = vst [vmem:[#allocation5 + $0x60] sm:$0xff] %v104_v47 }
  0x90   :  { %121 = vst [vmem:[#allocation5 + $0x68] sm:$0xff] %v105_v48 }
  0x91   :  { %136 = dma.vmem_to_hbm [thread:$0]  %s129_s3, 2048, %s131_s6, [#allocation4], %s204_s14, %s204_s14, %s205_s15  }
  0x92   :  { %201 = dma.done.wait [#allocation4], 2048  }
  0x93   :  { %202 = vsyncadd [#allocation4], 4294965248 }
  0x94   :  { %141 = vsyncpa [#allocation3], 1 }
  0x95   :  { %142 = vsyncpa [#allocation4], 1 }

</bundles_post_ra>
